<compile_context>
chip_gen: v5e
topology: v5e:2x2
jax: 0.10.0
libtpu: 0.0.40
codegen_flags: <defaults>
</compile_context>

<pallas_src>
import functools

import jax
import jax.numpy as jnp
from jax.experimental import pallas as pl
from jax.experimental.pallas import tpu as pltpu


VMEM_LIMIT_BYTES = 32 * 1024 * 1024   # scoped-VMEM limit (safe on v5e/v6e/v7x)
FUSED_SLAB_BYTES = 4 * 1024 * 1024    # max per-image (C, HW) slab for fused path
TILE_BYTES = 2 * 1024 * 1024          # spatial tile byte target for tiled fallback


def _round_up(x, m):
    return (x + m - 1) // m * m


# ----------------------- fused single-pass kernel -----------------------

def _fused_se_kernel(inv_hw, x_ref, w1_ref, b1_ref, w2_ref, b2_ref, o_ref):
    """Whole image resident: pool + fc1 + ReLU + fc2 + sigmoid + scale.

    x_ref : (1, C, HW) full lane-dense image (native dtype)
    w1    : (R, C)  fc1 weight     b1 : (R, 1)
    w2    : (C, R)  fc2 weight     b2 : (C, 1)
    o_ref : (1, C, HW) output (same dtype as x)
    """
    x = x_ref[0].astype(jnp.float32)                        # (C, HW)
    pooled = jnp.sum(x, axis=-1, keepdims=True) * inv_hw    # (C, 1) mean
    z = jnp.dot(w1_ref[...], pooled,
                preferred_element_type=jnp.float32) + b1_ref[...]
    z = jnp.maximum(z, 0.0)                                  # ReLU
    g = jnp.dot(w2_ref[...], z,
                preferred_element_type=jnp.float32) + b2_ref[...]
    g = 1.0 / (1.0 + jnp.exp(-g))                            # sigmoid, (C, 1)
    o_ref[...] = (x * g).astype(o_ref.dtype)[None]           # (1, C, HW)


def _se_fused(x_flat, w1, b1c, w2, b2c):
    N, C, HW = x_flat.shape
    R = w1.shape[0]
    return pl.pallas_call(
        functools.partial(_fused_se_kernel, 1.0 / float(HW)),
        out_shape=jax.ShapeDtypeStruct((N, C, HW), x_flat.dtype),
        grid=(N,),
        in_specs=[
            pl.BlockSpec((1, C, HW), lambda n: (n, 0, 0)),
            pl.BlockSpec((R, C), lambda n: (0, 0)),
            pl.BlockSpec((R, 1), lambda n: (0, 0)),
            pl.BlockSpec((C, R), lambda n: (0, 0)),
            pl.BlockSpec((C, 1), lambda n: (0, 0)),
        ],
        out_specs=pl.BlockSpec((1, C, HW), lambda n: (n, 0, 0)),
        compiler_params=pltpu.CompilerParams(
            dimension_semantics=("parallel",),
            vmem_limit_bytes=VMEM_LIMIT_BYTES),
    )(x_flat, w1, b1c, w2, b2c)


# ------------------- tiled two-pass fallback (big HW) -------------------

def _gate_kernel(hw, inv_hw, thw, x_ref, w1_ref, b1_ref, w2_ref, b2_ref,
                 gate_ref, acc_ref):
    """Tiled global-avg-pool + fused SE MLP in the last-tile epilogue."""
    t = pl.program_id(1)

    @pl.when(t == 0)
    def _init():
        acc_ref[...] = jnp.zeros_like(acc_ref)

    x = x_ref[0].astype(jnp.float32)                         # (C, thw)
    # Mask the ragged tail tile (no jnp.pad copies in the wrapper).
    col = jax.lax.broadcasted_iota(jnp.int32, x.shape, 1) + t * thw
    x = jnp.where(col < hw, x, 0.0)
    # Per-tile channel partial sum (hidden under DMA on this HBM-bound op).
    acc_ref[...] += jnp.sum(x, axis=-1, keepdims=True)       # (C, 1)

    @pl.when(t == pl.num_programs(1) - 1)
    def _finalize():
        pooled = acc_ref[...] * inv_hw                       # (C, 1)
        z = jnp.dot(w1_ref[...], pooled,
                    preferred_element_type=jnp.float32) + b1_ref[...]
        z = jnp.maximum(z, 0.0)
        g = jnp.dot(w2_ref[...], z,
                    preferred_element_type=jnp.float32) + b2_ref[...]
        gate_ref[...] = (1.0 / (1.0 + jnp.exp(-g)))[None]    # (1, C, 1)


def _scale_kernel(x_ref, gate_ref, o_ref):
    o_ref[...] = (x_ref[...].astype(jnp.float32) * gate_ref[...]).astype(o_ref.dtype)


def _se_two_pass(x_flat, w1, b1c, w2, b2c):
    N, C, HW = x_flat.shape
    R = w1.shape[0]
    itemsize = jnp.dtype(x_flat.dtype).itemsize
    # Byte-sized spatial tile (multiple of 128 lanes), no padding of x.
    thw = max(128, (TILE_BYTES // (C * itemsize)) // 128 * 128)
    thw = min(thw, _round_up(HW, 128))
    T = pl.cdiv(HW, thw)

    gate = pl.pallas_call(
        functools.partial(_gate_kernel, HW, 1.0 / float(HW), thw),
        out_shape=jax.ShapeDtypeStruct((N, C, 1), jnp.float32),
        grid=(N, T),
        in_specs=[
            pl.BlockSpec((1, C, thw), lambda n, t: (n, 0, t)),
            pl.BlockSpec((R, C), lambda n, t: (0, 0)),
            pl.BlockSpec((R, 1), lambda n, t: (0, 0)),
            pl.BlockSpec((C, R), lambda n, t: (0, 0)),
            pl.BlockSpec((C, 1), lambda n, t: (0, 0)),
        ],
        out_specs=pl.BlockSpec((1, C, 1), lambda n, t: (n, 0, 0)),
        scratch_shapes=[pltpu.VMEM((C, 1), jnp.float32)],
        compiler_params=pltpu.CompilerParams(
            dimension_semantics=("parallel", "arbitrary"),
            vmem_limit_bytes=VMEM_LIMIT_BYTES),
    )(x_flat, w1, b1c, w2, b2c)

    out = pl.pallas_call(
        _scale_kernel,
        out_shape=jax.ShapeDtypeStruct((N, C, HW), x_flat.dtype),
        grid=(N, T),
        in_specs=[
            pl.BlockSpec((1, C, thw), lambda n, t: (n, 0, t)),
            pl.BlockSpec((1, C, 1), lambda n, t: (n, 0, 0)),
        ],
        out_specs=pl.BlockSpec((1, C, thw), lambda n, t: (n, 0, t)),
        compiler_params=pltpu.CompilerParams(
            dimension_semantics=("parallel", "parallel"),
            vmem_limit_bytes=VMEM_LIMIT_BYTES),
    )(x_flat, gate)
    return out


# ------------------------------ wrapper ------------------------------

def fast_se_module(x_nchw, params, force_two_pass=False):
    """FastSEModule.forward.  x_nchw: (N, C, H, W) like PyTorch.

    params = (w1, b1, w2, b2) with
      w1 = fc1.weight.reshape(R, C), b1 = fc1.bias (R,)
      w2 = fc2.weight.reshape(C, R), b2 = fc2.bias (C,)
    Output has the same dtype as x_nchw.
    """
    w1, b1, w2, b2 = params
    N, C, H, W = x_nchw.shape
    HW = H * W

    # Lane-dense layout, native dtype (no f32 copy of x in HBM).
    x_flat = x_nchw.reshape(N, C, HW)

    w1f = w1.astype(jnp.float32)
    b1c = b1.reshape(-1, 1).astype(jnp.float32)
    w2f = w2.astype(jnp.float32)
    b2c = b2.reshape(-1, 1).astype(jnp.float32)

    slab_bytes = C * HW * jnp.dtype(x_flat.dtype).itemsize
    if (not force_two_pass) and slab_bytes <= FUSED_SLAB_BYTES:
        out = _se_fused(x_flat, w1f, b1c, w2f, b2c)
    else:
        out = _se_two_pass(x_flat, w1f, b1c, w2f, b2c)
    return out.reshape(N, C, H, W)


# --------------------------- pure-JAX reference ---------------------------

def fast_se_ref(x, w1, b1, w2, b2):
    pooled = x.reshape(x.shape[0], x.shape[1], -1).mean(-1)   # (N, C)
    z = jnp.maximum(pooled @ w1.T + b1, 0.0)                  # (N, R)
    g = jax.nn.sigmoid(z @ w2.T + b2)                         # (N, C)
    return x * g[:, :, None, None]


# ------------------------------- main -------------------------------

if __name__ == "__main__":
    key = jax.random.PRNGKey(0)
    kx, k1, k2, k3, k4 = jax.random.split(key, 5)

    # Primary (fused) path: channels=64, reduction_channels=16, 16x16 map.
    N, C, H, W, R = 2, 64, 16, 16, 16
    x = jax.random.normal(kx, (N, C, H, W), jnp.float32)
    lim1 = 1.0 / (C ** 0.5)
    w1 = jax.random.uniform(k1, (R, C), jnp.float32, -lim1, lim1)
    b1 = jax.random.uniform(k2, (R,), jnp.float32, -lim1, lim1)
    lim2 = 1.0 / (R ** 0.5)
    w2 = jax.random.uniform(k3, (C, R), jnp.float32, -lim2, lim2)
    b2 = jax.random.uniform(k4, (C,), jnp.float32, -lim2, lim2)

    out = jax.jit(fast_se_module)(x, (w1, b1, w2, b2))
    jax.block_until_ready(out)
    ref = fast_se_ref(x, w1, b1, w2, b2)
    assert out.shape == x.shape and out.dtype == x.dtype
    assert bool(jnp.allclose(out, ref, rtol=1e-4, atol=1e-4)), \
        float(jnp.max(jnp.abs(out - ref)))

    # Tiled fallback path (ragged HW, masked tail, no padding) at tiny shapes.
    N2, C2, H2, W2, R2 = 1, 8, 5, 7, 4
    x2 = jax.random.normal(k1, (N2, C2, H2, W2), jnp.float32)
    w1b = jax.random.uniform(k2, (R2, C2), jnp.float32, -0.3, 0.3)
    b1b = jax.random.uniform(k3, (R2,), jnp.float32, -0.3, 0.3)
    w2b = jax.random.uniform(k4, (C2, R2), jnp.float32, -0.3, 0.3)
    b2b = jax.random.uniform(kx, (C2,), jnp.float32, -0.3, 0.3)

    out2 = fast_se_module(x2, (w1b, b1b, w2b, b2b), force_two_pass=True)
    jax.block_until_ready(out2)
    ref2 = fast_se_ref(x2, w1b, b1b, w2b, b2b)
    assert out2.shape == x2.shape and out2.dtype == x2.dtype
    assert bool(jnp.allclose(out2, ref2, rtol=1e-4, atol=1e-4)), \
        float(jnp.max(jnp.abs(out2 - ref2)))

    print("KERNEL_OK")
</pallas_src>

<mosaic_0001>
module attributes {stable_mosaic.version = 11 : i64} {
  func.func @_fused_se_kernel(%arg0: i32, %arg1: memref<1x64x256xf32, #tpu.memory_space<vmem>>, %arg2: memref<16x64xf32, #tpu.memory_space<vmem>>, %arg3: memref<16x1xf32, #tpu.memory_space<vmem>>, %arg4: memref<64x16xf32, #tpu.memory_space<vmem>>, %arg5: memref<64x1xf32, #tpu.memory_space<vmem>>, %arg6: memref<1x64x256xf32, #tpu.memory_space<vmem>>) attributes {dimension_semantics = [#tpu.dimension_semantics<parallel>], iteration_bounds = array<i64: 2>, scalar_prefetch = 0 : i64, scratch_operands = 0 : i64, tpu.core_type = #tpu.core_type<tc>, window_params = [{transform_indices = @transform_0, window_bounds = array<i64: 1, 64, 256>}, {pipeline_mode = #tpu.pipeline_mode<synchronous>, transform_indices = @transform_1, window_bounds = array<i64: 16, 64>}, {pipeline_mode = #tpu.pipeline_mode<synchronous>, transform_indices = @transform_2, window_bounds = array<i64: 16, 1>}, {pipeline_mode = #tpu.pipeline_mode<synchronous>, transform_indices = @transform_3, window_bounds = array<i64: 64, 16>}, {pipeline_mode = #tpu.pipeline_mode<synchronous>, transform_indices = @transform_4, window_bounds = array<i64: 64, 1>}, {transform_indices = @transform_5, window_bounds = array<i64: 1, 64, 256>}]} {
    %c0 = arith.constant 0 : index
    %c0_0 = arith.constant 0 : index
    %c0_1 = arith.constant 0 : index
    %0 = vector.load %arg1[%c0, %c0_0, %c0_1] : memref<1x64x256xf32, #tpu.memory_space<vmem>>, vector<1x64x256xf32>
    %1 = vector.shape_cast %0 : vector<1x64x256xf32> to vector<64x256xf32>
    %cst = arith.constant dense<0.000000e+00> : vector<64xf32>
    %2 = vector.multi_reduction <add>, %1, %cst [1] : vector<64x256xf32> to vector<64xf32>
    %3 = vector.shape_cast %2 : vector<64xf32> to vector<64x1xf32>
    %cst_2 = arith.constant 3.906250e-03 : f32
    %4 = vector.broadcast %cst_2 : f32 to vector<64x1xf32>
    %5 = arith.mulf %3, %4 : vector<64x1xf32>
    %c0_3 = arith.constant 0 : index
    %c0_4 = arith.constant 0 : index
    %6 = vector.load %arg2[%c0_3, %c0_4] : memref<16x64xf32, #tpu.memory_space<vmem>>, vector<16x64xf32>
    %cst_5 = arith.constant dense<0.000000e+00> : vector<16x1xf32>
    %7 = tpu.matmul %6, %5, %cst_5 {dimension_numbers = #tpu.dot_dimension_numbers<[1], [0], [0], [1], [0, 0, 1, 1], [], []>} : vector<16x64xf32>, vector<64x1xf32>, vector<16x1xf32> -> vector<16x1xf32>
    %c0_6 = arith.constant 0 : index
    %c0_7 = arith.constant 0 : index
    %8 = vector.load %arg3[%c0_6, %c0_7] : memref<16x1xf32, #tpu.memory_space<vmem>>, vector<16x1xf32>
    %9 = arith.addf %7, %8 : vector<16x1xf32>
    %cst_8 = arith.constant 0.000000e+00 : f32
    %10 = vector.broadcast %cst_8 : f32 to vector<16x1xf32>
    %11 = arith.maximumf %9, %10 : vector<16x1xf32>
    %c0_9 = arith.constant 0 : index
    %c0_10 = arith.constant 0 : index
    %12 = vector.load %arg4[%c0_9, %c0_10] : memref<64x16xf32, #tpu.memory_space<vmem>>, vector<64x16xf32>
    %cst_11 = arith.constant dense<0.000000e+00> : vector<64x1xf32>
    %13 = tpu.matmul %12, %11, %cst_11 {dimension_numbers = #tpu.dot_dimension_numbers<[1], [0], [0], [1], [0, 0, 1, 1], [], []>} : vector<64x16xf32>, vector<16x1xf32>, vector<64x1xf32> -> vector<64x1xf32>
    %c0_12 = arith.constant 0 : index
    %c0_13 = arith.constant 0 : index
    %14 = vector.load %arg5[%c0_12, %c0_13] : memref<64x1xf32, #tpu.memory_space<vmem>>, vector<64x1xf32>
    %15 = arith.addf %13, %14 : vector<64x1xf32>
    %cst_14 = arith.constant 0.000000e+00 : f32
    %16 = vector.broadcast %cst_14 : f32 to vector<64x1xf32>
    %17 = arith.subf %16, %15 : vector<64x1xf32>
    %18 = math.exp %17 : vector<64x1xf32>
    %cst_15 = arith.constant 1.000000e+00 : f32
    %19 = vector.broadcast %cst_15 : f32 to vector<64x1xf32>
    %20 = arith.addf %19, %18 : vector<64x1xf32>
    %cst_16 = arith.constant 1.000000e+00 : f32
    %21 = vector.broadcast %cst_16 : f32 to vector<64x1xf32>
    %22 = arith.divf %21, %20 : vector<64x1xf32>
    %23 = vector.broadcast %22 : vector<64x1xf32> to vector<64x256xf32>
    %24 = arith.mulf %1, %23 : vector<64x256xf32>
    %25 = vector.shape_cast %24 : vector<64x256xf32> to vector<1x64x256xf32>
    %c0_17 = arith.constant 0 : index
    %c0_18 = arith.constant 0 : index
    %c0_19 = arith.constant 0 : index
    %26 = vector.load %arg6[%c0_17, %c0_18, %c0_19] : memref<1x64x256xf32, #tpu.memory_space<vmem>>, vector<1x64x256xf32>
    tpu.vector_store %arg6[%c0_17, %c0_18, %c0_19], %25 {strides = array<i32>} : memref<1x64x256xf32, #tpu.memory_space<vmem>>, vector<1x64x256xf32>,
    return
  }
  func.func @transform_0(%arg0: i32) -> (i32, i32, i32) {
    %c0_i32 = arith.constant 0 : i32
    %c0_i32_0 = arith.constant 0 : i32
    %c0_i32_1 = arith.constant 0 : i32
    return %arg0, %c0_i32, %c0_i32_0 : i32, i32, i32
  }
  func.func @transform_1(%arg0: i32) -> (i32, i32) {
    %c0_i32 = arith.constant 0 : i32
    %c0_i32_0 = arith.constant 0 : i32
    %c0_i32_1 = arith.constant 0 : i32
    return %c0_i32, %c0_i32_0 : i32, i32
  }
  func.func @transform_2(%arg0: i32) -> (i32, i32) {
    %c0_i32 = arith.constant 0 : i32
    %c0_i32_0 = arith.constant 0 : i32
    %c0_i32_1 = arith.constant 0 : i32
    return %c0_i32, %c0_i32_0 : i32, i32
  }
  func.func @transform_3(%arg0: i32) -> (i32, i32) {
    %c0_i32 = arith.constant 0 : i32
    %c0_i32_0 = arith.constant 0 : i32
    %c0_i32_1 = arith.constant 0 : i32
    return %c0_i32, %c0_i32_0 : i32, i32
  }
  func.func @transform_4(%arg0: i32) -> (i32, i32) {
    %c0_i32 = arith.constant 0 : i32
    %c0_i32_0 = arith.constant 0 : i32
    %c0_i32_1 = arith.constant 0 : i32
    return %c0_i32, %c0_i32_0 : i32, i32
  }
  func.func @transform_5(%arg0: i32) -> (i32, i32, i32) {
    %c0_i32 = arith.constant 0 : i32
    %c0_i32_0 = arith.constant 0 : i32
    %c0_i32_1 = arith.constant 0 : i32
    return %arg0, %c0_i32, %c0_i32_0 : i32, i32, i32
  }
}

</mosaic_0001>

<bundles_post_ra>
// kernel: fast_se_module.1
= control target key start
LH: loop header
LB: loop body
LE: loop exit
PB: predicated region body
PF: predicated region fallthrough
CT: control target
= control target key end

     0   :  { %s780_s18 = smov 0   ;;  %s1018_s0 = inlined_call_operand.vmem [shape: f32[2,64,256], index: 0, kind: input, shape index: {}]   ;;  %s1019_s1 = inlined_call_operand.vmem [shape: f32[16,64], index: 1, kind: input, shape index: {}]   ;;  %s1020_s2 = inlined_call_operand.vmem [shape: f32[16,1], index: 2, kind: input, shape index: {}]   ;;  %s1021_s3 = inlined_call_operand.vmem [shape: f32[64,16], index: 3, kind: input, shape index: {}]   ;;  %s1022_s4 = inlined_call_operand.vmem [shape: f32[64,1], index: 4, kind: input, shape index: {}]   ;;  %s1023_s5 = inlined_call_operand.vmem [shape: f32[2,64,256], index: 5, kind: output, shape index: {}]  }
   0x1 LB: > { %s670_s19 = sadd.s32 4294967295, %s747_s18   ;;  %p674_p0 = scmp.ge.s32.totalorder %s747_s18, 1  ;;  %s747_s18 = sphi %s780_s18, %s15_s18  }
   0x2   : > { %p187_p1 = scmp.lt.s32.totalorder %s747_s18, 3 }
   0x4   : > { %p188_p2 = pnand %p674_p0, %p187_p1 }
   0x5   : > { %p215_p3 = scmp.lt.s32.totalorder (!%p188_p2), %s670_s19, 1 }
   0x6   : > { %191 = sbr.rel (%p188_p2) target bundleno = 608 (0x260), region = 40 }
   0xb   : > { %s1027_s19 = smov (!%p215_p3, %s670_s19), 1  ;;  %v273_v40 = vld [vmem:[%s1019_s1] sm:$0xff]  ;;  %vm277_vm0 = vcmask 523264   ;;  %v274_v41 = vld [vmem:[%s1019_s1 + $0x8] sm:$0xff]  ;;  %vm325_vm1 = vcmask 130048   ;;  %v312_v51 = vld [vmem:[%s1021_s3 + $0x18] sm:$0xff] }
   0xc   : > { %s691_s20 = sshll.u32 %s1027_s19, 7  ;;  %v275_v43 = vld [vmem:[%s1020_s2] sm:$0xff]  ;;  %v276_v44 = vld [vmem:[%s1020_s2 + $0x8] sm:$0xff]  ;;  %v315_v52 = vld [vmem:[%s1021_s3 + $0x30] sm:$0xff]  ;;  %v749_v61 = vmov 0  }
   0xd   : > { %s219_s23 = scalar_lea.vmem %s1018_s0, %s691_s20  ;;  %v309_v50 = vld [vmem:[%s1021_s3] sm:$0xff]  ;;  %v310_v53 = vld [vmem:[%s1021_s3 + $0x8] sm:$0xff]  ;;  %v316_v55 = vld [vmem:[%s1021_s3 + $0x38] sm:$0xff]  ;;  %706 = vset.pattern.permute.xlu2 %v749_v61  ;;  %707 = vset.pattern.permute.xlu0 %v749_v61  ;;  %s981_s22 = scalar_lea.vmem %s1023_s5, %s691_s20 }
   0xe   : > { %v796_v0 = vld [vmem:[%s219_s23 + $0x70] sm:$0xff]  ;;  %v798_v1 = vld [vmem:[%s219_s23 + $0x78] sm:$0xff]  ;;  %v814_v9 = vld [vmem:[%s219_s23 + $0x60] sm:$0xff]  ;;  %708 = vset.pattern.permute.xlu1 %v749_v61 }
   0xf   : > { %v800_v2 = vld [vmem:[%s219_s23 + $0x50] sm:$0xff]  ;;  %v262_v3 = vadd.f32 %v798_v1, %v796_v0  ;;  %v804_v4 = vld [vmem:[%s219_s23 + $0x58] sm:$0xff]  ;;  %v816_v10 = vld [vmem:[%s219_s23 + $0x68] sm:$0xff] }
  0x10   : > { %v256_v5 = vadd.f32 %v804_v4, %v800_v2  ;;  %v808_v6 = vld [vmem:[%s219_s23 + $0x30] sm:$0xff]  ;;  %v810_v7 = vld [vmem:[%s219_s23 + $0x38] sm:$0xff]  ;;  %v818_v11 = vld [vmem:[%s219_s23 + $0x40] sm:$0xff]  ;;  %v259_v15 = vadd.f32 %v816_v10, %v814_v9 }
  0x11   : > { %263 = vadd.xlane.f32.xlu0 %v262_v3  ;;  %v250_v8 = vadd.f32 %v810_v7, %v808_v6  ;;  %v820_v12 = vld [vmem:[%s219_s23 + $0x48] sm:$0xff]  ;;  %v822_v13 = vld [vmem:[%s219_s23 + $0x20] sm:$0xff]  ;;  %v832_v18 = vld [vmem:[%s219_s23 + $0x10] sm:$0xff] }
  0x12   : > { %257 = vadd.xlane.f32.xlu1 %v256_v5  ;;  %v824_v14 = vld [vmem:[%s219_s23 + $0x28] sm:$0xff]  ;;  %v253_v16 = vadd.f32 %v820_v12, %v818_v11  ;;  %v834_v19 = vld [vmem:[%s219_s23 + $0x18] sm:$0xff]  ;;  %v836_v20 = vld [vmem:[%s219_s23] sm:$0xff] }
  0x13   : > { %251 = vadd.xlane.f32.xlu2 %v250_v8  ;;  %v247_v17 = vadd.f32 %v824_v14, %v822_v13  ;;  %v838_v21 = vld [vmem:[%s219_s23 + $0x8] sm:$0xff]  ;;  %v244_v22 = vadd.f32 %v834_v19, %v832_v18  ;;  %v313_v54 = vld [vmem:[%s1021_s3 + $0x20] sm:$0xff]  ;;  %v311_v56 = vld [vmem:[%s1021_s3 + $0x10] sm:$0xff] }
  0x14   : > { %v241_v23 = vadd.f32 %v838_v21, %v836_v20  ;;  %v314_v57 = vld [vmem:[%s1021_s3 + $0x28] sm:$0xff]  ;;  %v317_v58 = vld [vmem:[%s1022_s4] sm:$0xff]  ;;  %v320_v3 = vld [vmem:[%s1022_s4 + $0x18] sm:$0xff] }
  0x15   : > { %v323_v5 = vld [vmem:[%s1022_s4 + $0x30] sm:$0xff]  ;;  %v318_v8 = vld [vmem:[%s1022_s4 + $0x8] sm:$0xff] }
  0x19   : > { %260 = vadd.xlane.f32.xlu0 %v259_v15 }
  0x1a   : > { %254 = vadd.xlane.f32.xlu1 %v253_v16 }
  0x1b   : > { %248 = vadd.xlane.f32.xlu2 %v247_v17 }
  0x21   : > { %245 = vadd.xlane.f32.xlu0 %v244_v22 }
  0x22   : > { %242 = vadd.xlane.f32.xlu1 %v241_v23 }
  0x84   : > { %v264_v24 = vpop.xlane.xlu0 %263 }
  0x85   : > { %v272_v25 = vmul.f32 0.00390625, %v264_v24  ;;  %v258_v26 = vpop.xlane.xlu1 %257 }
  0x86   : > { %v252_v27 = vpop.xlane.xlu2 %251  ;;  %v270_v31 = vmul.f32 0.00390625, %v258_v26 }
  0x87   : > { %292 = vmatpush.msra.mxu0 %v272_v25  ;;  %v268_v34 = vmul.f32 0.00390625, %v252_v27 }
  0x8c   : > { %v261_v28 = vpop.xlane.xlu0 %260 }
  0x8d   : > { %v271_v29 = vmul.f32 0.00390625, %v261_v28  ;;  %v255_v30 = vpop.xlane.xlu1 %254 }
  0x8e   : > { %v269_v32 = vmul.f32 0.00390625, %v255_v30  ;;  %v249_v33 = vpop.xlane.xlu2 %248 }
  0x8f   : > { %293 = vmatpush.msra.mxu0 %v271_v29  ;;  %v267_v35 = vmul.f32 0.00390625, %v249_v33  ;;  %v324_v33 = vld [vmem:[%s1022_s4 + $0x38] sm:$0xff] }
  0x91   : > { %294 = vmatpush.msra.mxu0 %v270_v31 }
  0x93   : > { %295 = vmatpush.msra.mxu0 %v269_v32  ;;  %v321_v32 = vld [vmem:[%s1022_s4 + $0x20] sm:$0xff] }
  0x94   : > { %v246_v36 = vpop.xlane.xlu0 %245 }
  0x95   : > { %296 = vmatpush.msra.mxu0 %v268_v34  ;;  %v266_v37 = vmul.f32 0.00390625, %v246_v36  ;;  %v243_v38 = vpop.xlane.xlu1 %242 }
  0x96   : > { %v265_v39 = vmul.f32 0.00390625, %v243_v38 }
  0x97   : > { %297 = vmatpush.msra.mxu0 %v267_v35  ;;  %v319_v35 = vld [vmem:[%s1022_s4 + $0x10] sm:$0xff] }
  0x99   : > { %298 = vmatpush.msra.mxu0 %v266_v37 }
  0x9b   : > { %299 = vmatpush.msra.mxu0 %v265_v39 }
  0x9c   : > { %679 = vmatmul.msk.f32.vlgmr.msra.gmra.mxu0 %vm277_vm0, %v273_v40 }
  0xa4   : > { %680 = vmatmul.msk.f32.gmra.mxu0 %vm277_vm0, %v274_v41 }
 0x119   : > { %v301_v42 = vpop.f32.mrf.mxu0 }
 0x11a   : > { %v302_v46 = vadd.f32 %v301_v42, %v275_v43 }
 0x11c   : > { %v307_v49 = vmax.f32 %v302_v46, 0.0 }
 0x121   : > { %v304_v45 = vpop.f32.mrf.mxu0 }
 0x122   : > { %v305_v47 = vadd.f32 %v304_v45, %v276_v44 }
 0x124   : > { %v308_v48 = vmax.f32 %v305_v47, 0.0 }
 0x126   : > { %364 = vmatpush.msra.mxu1 %v308_v48  ;;  %693 = vmatpush.msra.mxu2 %v308_v48 }
 0x127   : > { %694 = vmatpush.msra.mxu3 %v308_v48 }
 0x128   : > { %365 = vmatpush.msra.mxu1 %v307_v49  ;;  %695 = vmatpush.msra.mxu2 %v307_v49 }
 0x129   : > { %696 = vmatpush.msra.mxu3 %v307_v49  ;;  %681 = vmatmul.msk.f32.vlgmr.msra.gmra.mxu1 %vm325_vm1, %v309_v50  ;;  %v322_v50 = vld [vmem:[%s1022_s4 + $0x28] sm:$0xff] }
 0x12a   : > { %684 = vmatmul.msk.f32.vlgmr.msra.gmra.mxu2 %vm325_vm1, %v312_v51  ;;  %687 = vmatmul.msk.f32.vlgmr.msra.gmra.mxu3 %vm325_vm1, %v315_v52 }
 0x131   : > { %682 = vmatmul.msk.f32.gmra.mxu1 %vm325_vm1, %v310_v53 }
 0x132   : > { %685 = vmatmul.msk.f32.gmra.mxu2 %vm325_vm1, %v313_v54  ;;  %688 = vmatmul.msk.f32.gmra.mxu3 %vm325_vm1, %v316_v55 }
 0x139   : > { %683 = vmatmul.msk.f32.gmra.mxu1 %vm325_vm1, %v311_v56 }
 0x13a   : > { %686 = vmatmul.msk.f32.gmra.mxu2 %vm325_vm1, %v314_v57 }
 0x1a6   : > { %v367_v59 = vpop.f32.mrf.mxu1 }
 0x1a7   : > { %v368_v60 = vadd.f32 %v367_v59, %v317_v58 }
 0x1a9   : > { %v391_v62 = vsub.f32 0.0, %v368_v60 }
 0x1ab   : > { %v399_v63 = vmul.f32 1.442695, %v391_v62 }
 0x1ad   : > { %709 = vpow2.f32 %v399_v63  ;;  %v376_v15 = vpop.f32.mrf.mxu2  ;;  %v385_v16 = vpop.f32.mrf.mxu3 }
 0x1ae   : > { %v377_v17 = vadd.f32 %v376_v15, %v320_v3  ;;  %v370_v22 = vpop.f32.mrf.mxu1  ;;  %v386_v23 = vadd.f32 %v385_v16, %v323_v5 }
 0x1af   : > { %v371_v24 = vadd.f32 %v370_v22, %v318_v8 }
 0x1b0   : > { %v394_v25 = vsub.f32 0.0, %v377_v17  ;;  %v397_v26 = vsub.f32 0.0, %v386_v23 }
 0x1b1   : > { %v392_v27 = vsub.f32 0.0, %v371_v24 }
 0x1b2   : > { %v405_v28 = vmul.f32 1.442695, %v394_v25  ;;  %v411_v31 = vmul.f32 1.442695, %v397_v26 }
 0x1b3   : > { %v710_v29 = vpop.eup %709  ;;  %v401_v30 = vmul.f32 1.442695, %v392_v27 }
 0x1b4   : > { %v415_v34 = vadd.f32 1.0, %v710_v29  ;;  %711 = vpow2.f32 %v405_v28 }
 0x1b5   : > { %713 = vpow2.f32 %v401_v30  ;;  %v379_v36 = vpop.f32.mrf.mxu2  ;;  %v388_v37 = vpop.f32.mrf.mxu3 }
 0x1b6   : > { %715 = vrcp.f32 %v415_v34  ;;  %v380_v38 = vadd.f32 %v379_v36, %v321_v32  ;;  %v373_v39 = vpop.f32.mrf.mxu1  ;;  %v389_v40 = vadd.f32 %v388_v37, %v324_v33  ;;  %v434_v61 = vand.u32 2147483648, %v415_v34 }
 0x1b7   : > { %717 = vpow2.f32 %v411_v31  ;;  %v374_v41 = vadd.f32 %v373_v39, %v319_v35  ;;  %v432_v63 = vand.u32 2147483647, %v415_v34  ;;  %vm428_vm3 = vweird.f32 %v415_v34 }
 0x1b8   : > { %v395_v42 = vsub.f32 0.0, %v380_v38  ;;  %v398_v44 = vsub.f32 0.0, %v389_v40  ;;  %v435_v22 = vor.u32 1.1754944e-38, %v434_v61 }
 0x1b9   : > { %v393_v43 = vsub.f32 0.0, %v374_v41  ;;  %vm433_vm5 = vcmp.eq.f32.partialorder %v432_v63, 8.507059e+37 }
 0x1ba   : > { %v712_v45 = vpop.eup %711  ;;  %v407_v46 = vmul.f32 1.442695, %v395_v42  ;;  %v413_v54 = vmul.f32 1.442695, %v398_v44 }
 0x1bb   : > { %v714_v47 = vpop.eup %713  ;;  %v909_v48 = vadd.f32 1.0, %v712_v45  ;;  %v403_v49 = vmul.f32 1.442695, %v393_v43 }
 0x1bc   : > { %v716_v51 = vpop.eup %715  ;;  %v914_v52 = vadd.f32 1.0, %v714_v47  ;;  %719 = vpow2.f32 %v407_v46 }
 0x1bd   : > { %v718_v53 = vpop.eup %717  ;;  %721 = vrcp.f32 %v909_v48  ;;  %v382_v55 = vpop.f32.mrf.mxu2  ;;  %v424_v56 = vmul.f32 %v716_v51, %v415_v34  ;;  %vm429_vm2 = vweird.f32 %v716_v51  ;;  %v479_v33 = vand.u32 2147483648, %v909_v48 }
 0x1be   : > { %723 = vrcp.f32 %v914_v52  ;;  %v918_v57 = vadd.f32 1.0, %v718_v53  ;;  %v383_v58 = vadd.f32 %v382_v55, %v322_v50  ;;  %vm430_vm4 = vmor %vm428_vm3, %vm429_vm2  ;;  %v449_v32 = vand.u32 2147483648, %v914_v52 }
 0x1bf   : > { %725 = vpow2.f32 %v403_v49  ;;  %v425_v59 = vsub.f32 1.0, %v424_v56  ;;  %v447_v38 = vand.u32 2147483647, %v914_v52  ;;  %v477_v39 = vand.u32 2147483647, %v909_v48 }
 0x1c0   : > { %v396_v60 = vsub.f32 0.0, %v383_v58  ;;  %727 = vpow2.f32 %v413_v54  ;;  %vm443_vm8 = vweird.f32 %v914_v52  ;;  %vm473_vm9 = vweird.f32 %v909_v48 }
 0x1c1   : > { %v426_v62 = vmul.f32 %v716_v51, %v425_v59  ;;  %729 = vrcp.f32 %v918_v57  ;;  %v450_v45 = vor.u32 1.1754944e-38, %v449_v32  ;;  %v480_v49 = vor.u32 1.1754944e-38, %v479_v33 }
 0x1c2   : > { %v720_v3 = vpop.eup %719  ;;  %v409_v5 = vmul.f32 1.442695, %v396_v60  ;;  %vm448_vm12 = vcmp.eq.f32.partialorder %v447_v38, 8.507059e+37  ;;  %vm478_vm13 = vcmp.eq.f32.partialorder %v477_v39, 8.507059e+37  ;;  %vm518_vm0 = vweird.f32 %v918_v57 }
 0x1c3   : > { %v722_v8 = vpop.eup %721  ;;  %v921_v15 = vadd.f32 1.0, %v720_v3  ;;  %v427_v16 = vadd.f32 %v716_v51, %v426_v62  ;;  %v522_v32 = vand.u32 2147483647, %v918_v57 }
 0x1c4   : > { %v724_v17 = vpop.eup %723  ;;  %731 = vpow2.f32 %v409_v5  ;;  %v469_v23 = vmul.f32 %v722_v8, %v909_v48  ;;  %vm474_vm6 = vweird.f32 %v722_v8 }
 0x1c5   : > { %v726_v24 = vpop.eup %725  ;;  %733 = vrcp.f32 %v921_v15  ;;  %v431_v25 = vsel %vm430_vm4, %v716_v51, %v427_v16  ;;  %v439_v26 = vmul.f32 %v724_v17, %v914_v52  ;;  %vm444_vm7 = vweird.f32 %v724_v17  ;;  %vm475_vm10 = vmor %vm473_vm9, %vm474_vm6 }
 0x1c6   : > { %v926_v27 = vadd.f32 1.0, %v726_v24  ;;  %v436_v28 = vsel %vm433_vm5, %v435_v22, %v431_v25  ;;  %v470_v29 = vsub.f32 1.0, %v469_v23  ;;  %v728_v30 = vpop.eup %727  ;;  %vm445_vm11 = vmor %vm443_vm8, %vm444_vm7  ;;  %v494_v59 = vand.u32 2147483648, %v921_v15 }
 0x1c7   : > { %545 = vperm.xlu2 %706, %v436_v28   ;;  %v440_v31 = vsub.f32 1.0, %v439_v26  ;;  %v930_v34 = vpop.eup %729  ;;  %v933_v35 = vadd.f32 1.0, %v728_v30  ;;  %v492_v61 = vand.u32 2147483647, %v921_v15  ;;  %vm488_vm15 = vweird.f32 %v921_v15 }
 0x1c8   : > { %735 = vrcp.f32 %v926_v27  ;;  %v471_v36 = vmul.f32 %v722_v8, %v470_v29  ;;  %v514_v46 = vmul.f32 %v930_v34, %v918_v57  ;;  %v464_v63 = vand.u32 2147483648, %v926_v27 }
 0x1c9   : > { %v441_v37 = vmul.f32 %v724_v17, %v440_v31  ;;  %737 = vrcp.f32 %v933_v35  ;;  %v462_v16 = vand.u32 2147483647, %v926_v27  ;;  %vm458_vm3 = vweird.f32 %v926_v27 }
 0x1ca   : > { %v732_v40 = vpop.eup %731  ;;  %v472_v41 = vadd.f32 %v722_v8, %v471_v36  ;;  %v515_v56 = vsub.f32 1.0, %v514_v46  ;;  %v495_v23 = vor.u32 1.1754944e-38, %v494_v59  ;;  %vm493_vm4 = vcmp.eq.f32.partialorder %v492_v61, 8.507059e+37 }
 0x1cb   : > { %v734_v42 = vpop.eup %733  ;;  %v939_v43 = vadd.f32 1.0, %v732_v40  ;;  %v442_v44 = vadd.f32 %v724_v17, %v441_v37  ;;  %vm519_vm5 = vweird.f32 %v930_v34  ;;  %v465_v26 = vor.u32 1.1754944e-38, %v464_v63 }
 0x1cc   : > { %v476_v47 = vsel %vm475_vm10, %v722_v8, %v472_v41  ;;  %v484_v50 = vmul.f32 %v734_v42, %v921_v15  ;;  %vm489_vm14 = vweird.f32 %v734_v42  ;;  %v524_v30 = vand.u32 2147483648, %v918_v57  ;;  %vm963_vm8 = vmor %vm518_vm0, %vm519_vm5 }
 0x1cd   : > { %739 = vrcp.f32 %v939_v43  ;;  %v446_v51 = vsel %vm445_vm11, %v724_v17, %v442_v44  ;;  %v481_v53 = vsel %vm478_vm13, %v480_v49, %v476_v47  ;;  %vm490_vm2 = vmor %vm488_vm15, %vm489_vm14  ;;  %v516_v17 = vmul.f32 %v930_v34, %v515_v56 }
 0x1ce   : > { %v736_v48 = vpop.eup %735  ;;  %v451_v52 = vsel %vm448_vm12, %v450_v45, %v446_v51  ;;  %v485_v54 = vsub.f32 1.0, %v484_v50  ;;  %vm463_vm7 = vcmp.eq.f32.partialorder %v462_v16, 8.507059e+37  ;;  %v509_v40 = vand.u32 2147483648, %v939_v43 }
 0x1cf   : > { %550 = vperm.xlu0 %707, %v451_v52   ;;  %560 = vperm.xlu2 %706, %v481_v53   ;;  %v454_v55 = vmul.f32 %v736_v48, %v926_v27  ;;  %v738_v62 = vpop.eup %737  ;;  %vm459_vm1 = vweird.f32 %v736_v48  ;;  %v517_v27 = vadd.f32 %v930_v34, %v516_v17  ;;  %v525_v41 = vor.u32 1.1754944e-38, %v524_v30 }
 0x1d0   : > { %v486_v58 = vmul.f32 %v734_v42, %v485_v54  ;;  %v529_v15 = vmul.f32 %v738_v62, %v933_v35  ;;  %vm460_vm6 = vmor %vm458_vm3, %vm459_vm1  ;;  %vm503_vm10 = vweird.f32 %v939_v43  ;;  %vm523_vm11 = vcmp.eq.f32.partialorder %v522_v32, 8.507059e+37 }
 0x1d1   : > { %v455_v60 = vsub.f32 1.0, %v454_v55  ;;  %v521_v44 = vsel %vm963_vm8, %v930_v34, %v517_v27  ;;  %v510_v46 = vor.u32 1.1754944e-38, %v509_v40  ;;  %vm533_vm14 = vweird.f32 %v933_v35 }
 0x1d2   : > { %v487_v3 = vadd.f32 %v734_v42, %v486_v58  ;;  %v530_v38 = vsub.f32 1.0, %v529_v15  ;;  %v526_v47 = vsel %vm523_vm11, %v525_v41, %v521_v44  ;;  %vm534_vm15 = vweird.f32 %v738_v62 }
 0x1d3   : > { %v740_v5 = vpop.eup %739  ;;  %v456_v8 = vmul.f32 %v736_v48, %v455_v60  ;;  %v539_v50 = vand.u32 2147483648, %v933_v35  ;;  %v537_v51 = vand.u32 2147483647, %v933_v35  ;;  %vm535_vm0 = vmor %vm533_vm14, %vm534_vm15 }
 0x1d4   : > { %v491_v22 = vsel %vm490_vm2, %v734_v42, %v487_v3  ;;  %v499_v24 = vmul.f32 %v740_v5, %v939_v43  ;;  %vm504_vm9 = vweird.f32 %v740_v5  ;;  %v507_v42 = vand.u32 2147483647, %v939_v43 }
 0x1d5   : > { %v457_v25 = vadd.f32 %v736_v48, %v456_v8  ;;  %v496_v28 = vsel %vm493_vm4, %v495_v23, %v491_v22  ;;  %vm505_vm12 = vmor %vm503_vm10, %vm504_vm9  ;;  %v531_v45 = vmul.f32 %v738_v62, %v530_v38  ;;  %v540_v34 = vor.u32 1.1754944e-38, %v539_v50 }
 0x1d6   : > { %v500_v29 = vsub.f32 1.0, %v499_v24  ;;  %vm508_vm13 = vcmp.eq.f32.partialorder %v507_v42, 8.507059e+37  ;;  %vm538_vm1 = vcmp.eq.f32.partialorder %v537_v51, 8.507059e+37 }
 0x1d7   : > { %v461_v31 = vsel %vm460_vm6, %v736_v48, %v457_v25  ;;  %565 = vperm.xlu2 %706, %v496_v28   ;;  %v532_v43 = vadd.f32 %v738_v62, %v531_v45 }
 0x1d8   : > { %v466_v33 = vsel %vm463_vm7, %v465_v26, %v461_v31  ;;  %v501_v36 = vmul.f32 %v740_v5, %v500_v29 }
 0x1d9   : > { %555 = vperm.xlu1 %708, %v466_v33   ;;  %v536_v48 = vsel %vm535_vm0, %v738_v62, %v532_v43 }
 0x1da   : > { %v502_v39 = vadd.f32 %v740_v5, %v501_v36  ;;  %v541_v52 = vsel %vm538_vm1, %v540_v34, %v536_v48 }
 0x1dc   : > { %v506_v57 = vsel %vm505_vm12, %v740_v5, %v502_v39 }
 0x1dd   : > { %v511_v49 = vsel %vm508_vm13, %v510_v46, %v506_v57 }
 0x1df   : > { %575 = vperm.xlu2 %706, %v526_v47  }
 0x1e1   : > { %570 = vperm.xlu1 %708, %v511_v49  }
 0x1e9   : > { %580 = vperm.xlu1 %708, %v541_v52  }
 0x221   : > { %v546_v53 = vpop.permute.xlu2 %545 }
 0x222   : > { %v583_v35 = vmul.f32 %v546_v53, %v836_v20  ;;  %v584_v54 = vmul.f32 %v546_v53, %v838_v21 }
 0x224   : > { %599 = vst [vmem:[%s981_s22] sm:$0xff] %v583_v35 }
 0x225   : > { %600 = vst [vmem:[%s981_s22 + $0x8] sm:$0xff] %v584_v54 }
 0x229   : > { %v561_v55 = vpop.permute.xlu2 %560 }
 0x22a   : > { %v589_v56 = vmul.f32 %v561_v55, %v808_v6  ;;  %v590_v58 = vmul.f32 %v561_v55, %v810_v7 }
 0x22c   : > { %605 = vst [vmem:[%s981_s22 + $0x30] sm:$0xff] %v589_v56 }
 0x22d   : > { %606 = vst [vmem:[%s981_s22 + $0x38] sm:$0xff] %v590_v58 }
 0x231   : > { %v566_v59 = vpop.permute.xlu2 %565 }
 0x232   : > { %v591_v60 = vmul.f32 %v566_v59, %v818_v11  ;;  %v592_v20 = vmul.f32 %v566_v59, %v820_v12 }
 0x234   : > { %607 = vst [vmem:[%s981_s22 + $0x40] sm:$0xff] %v591_v60 }
 0x235   : > { %608 = vst [vmem:[%s981_s22 + $0x48] sm:$0xff] %v592_v20 }
 0x239   : > { %v576_v21 = vpop.permute.xlu2 %575 }
 0x23a   : > { %v595_v61 = vmul.f32 %v576_v21, %v814_v9  ;;  %v596_v6 = vmul.f32 %v576_v21, %v816_v10 }
 0x23c   : > { %611 = vst [vmem:[%s981_s22 + $0x60] sm:$0xff] %v595_v61 }
 0x23d   : > { %612 = vst [vmem:[%s981_s22 + $0x68] sm:$0xff] %v596_v6 }
 0x241   : > { %v551_v7 = vpop.permute.xlu0 %550 }
 0x242   : > { %v585_v62 = vmul.f32 %v551_v7, %v832_v18  ;;  %v586_v11 = vmul.f32 %v551_v7, %v834_v19 }
 0x244   : > { %601 = vst [vmem:[%s981_s22 + $0x10] sm:$0xff] %v585_v62 }
 0x245   : > { %602 = vst [vmem:[%s981_s22 + $0x18] sm:$0xff] %v586_v11 }
 0x24b   : > { %v556_v12 = vpop.permute.xlu1 %555 }
 0x24c   : > { %v587_v63 = vmul.f32 %v556_v12, %v822_v13  ;;  %v588_v9 = vmul.f32 %v556_v12, %v824_v14 }
 0x24e   : > { %603 = vst [vmem:[%s981_s22 + $0x20] sm:$0xff] %v587_v63 }
 0x24f   : > { %604 = vst [vmem:[%s981_s22 + $0x28] sm:$0xff] %v588_v9 }
 0x253   : > { %v571_v10 = vpop.permute.xlu1 %570 }
 0x254   : > { %v593_v3 = vmul.f32 %v571_v10, %v800_v2  ;;  %v594_v5 = vmul.f32 %v571_v10, %v804_v4 }
 0x256   : > { %609 = vst [vmem:[%s981_s22 + $0x50] sm:$0xff] %v593_v3 }
 0x257   : > { %610 = vst [vmem:[%s981_s22 + $0x58] sm:$0xff] %v594_v5 }
 0x25b   : > { %v581_v18 = vpop.permute.xlu1 %580 }
 0x25c   : > { %v597_v19 = vmul.f32 %v581_v18, %v796_v0  ;;  %v598_v8 = vmul.f32 %v581_v18, %v798_v1 }
 0x25e   : > { %613 = vst [vmem:[%s981_s22 + $0x70] sm:$0xff] %v597_v19 }
 0x25f   : > { %614 = vst [vmem:[%s981_s22 + $0x78] sm:$0xff] %v598_v8 }
 0x260 PF: > { %s15_s18 = sadd.s32 1, %s747_s18  }
 0x261   : > { %p12_p4 = scmp.ge.s32.totalorder %s15_s18, 4  }
 0x263   :  { %14 = sbr.rel (!%p12_p4) target bundleno = 1 (0x1), region = 70 }

</bundles_post_ra>
